<compile_context>
chip_gen: v7x
topology: tpu7x:2x2x1
jax: 0.10.0
libtpu: 0.0.40
codegen_flags: <defaults>
</compile_context>

<pallas_src>
import jax
import jax.numpy as jnp
from jax import lax
from jax.experimental import pallas as pl
from jax.experimental.pallas import tpu as pltpu

LANE = 128
SUBLANE = 8


def _round_up(n, m):
    return ((n + m - 1) // m) * m


def rnn_forward_kernel(tok_ref, xtab_ref, whh_ref, woutb_ref, h0_ref,
                       probs_ref, hout_ref, hs_ref):
    """Fused (emb@W_ih+b) gather + Elman recurrence + logits + log_softmax.

    tok_ref  : (S,)        int32 token ids (SMEM)
    xtab_ref : (Vr, Hp)    precomputed  emb @ W_ih + (b_ih + b_hh)  table
    whh_ref  : (Hp, Hp)    hidden->hidden weight (transposed vs torch, padded)
    woutb_ref: (Hp+8, Vp)  rows 0:Hp = W_out^T (padded), row Hp = b_out
                           (padded vocab columns of the bias row are -1e30)
    h0_ref   : (1, Hp)     initial hidden state (padded with zeros)
    probs_ref: (S, Vp)     output log-probabilities (padded vocab)
    hout_ref : (1, Hp)     final hidden state (padded)
    hs_ref   : (S_pad, Hp) VMEM scratch holding per-step hidden states
    """
    seq_len = tok_ref.shape[0]
    Hp = whh_ref.shape[0]
    s_pad = hs_ref.shape[0]

    if s_pad != seq_len:                       # trace-time guard (rarely taken)
        hs_ref[...] = jnp.zeros_like(hs_ref)

    # ---- Serial recurrence h_t = tanh(xtab[tok_t] + h_{t-1} W_hh) ----------
    # Fully unrolled (seq_len is static and small); h stays in vregs, per-step
    # results go to scratch via the (otherwise idle) store slot.
    whh = whh_ref[...]
    h = h0_ref[...]                                           # (1, Hp)
    for t in range(seq_len):
        x_row = xtab_ref[pl.ds(tok_ref[t], 1), :]             # (1, Hp)
        pre = x_row + jnp.dot(h, whh, preferred_element_type=jnp.float32)
        h = jnp.tanh(pre)
        hs_ref[pl.ds(t, 1), :] = h
    hout_ref[...] = h

    # ---- Logits + stable log_softmax over the (padded) vocab ---------------
    hs = hs_ref[...]                                          # (S_pad, Hp)
    w_out = woutb_ref[pl.ds(0, Hp), :]                        # (Hp, Vp)
    b_out = woutb_ref[pl.ds(Hp, 1), :]                        # (1, Vp)
    logits = (jnp.dot(hs, w_out, preferred_element_type=jnp.float32)
              + b_out)                                        # (S_pad, Vp)
    m = jnp.max(logits, axis=-1, keepdims=True)
    shifted = logits - m
    lse = jnp.log(jnp.sum(jnp.exp(shifted), axis=-1, keepdims=True))
    out = shifted - lse
    probs_ref[...] = out[:seq_len, :]


def prepare_params(params, vocab_size, embedding_dim, hidden_size):
    """One-time fusion + lane padding of all weights (outside the hot path)."""
    Hp = _round_up(hidden_size, LANE)
    Vp = _round_up(vocab_size, LANE)
    Vr = _round_up(vocab_size, SUBLANE)

    # Fused per-token pre-activation table: row v = emb[v] @ W_ih + (b_ih+b_hh).
    xtab = params["emb"] @ params["w_ih"] + params["b_h"]          # (V, H)
    xtab = jnp.pad(xtab, ((0, Vr - vocab_size), (0, Hp - hidden_size)))

    w_hh = jnp.pad(params["w_hh"],
                   ((0, Hp - hidden_size), (0, Hp - hidden_size)))

    # Pack W_out^T and b_out into one operand (one fewer DMA).  Padded vocab
    # columns of the bias row get -1e30 so exp() of them is exactly 0.
    w_out = jnp.pad(params["w_out"],
                    ((0, Hp - hidden_size), (0, Vp - vocab_size)))
    b_out = jnp.concatenate(
        [params["b_out"],
         jnp.full((1, Vp - vocab_size), -1e30, jnp.float32)], axis=1)
    woutb = jnp.concatenate(
        [w_out, b_out, jnp.zeros((SUBLANE - 1, Vp), jnp.float32)], axis=0)

    return {
        "xtab": xtab,
        "w_hh": w_hh,
        "woutb": woutb,
        "dims": (vocab_size, embedding_dim, hidden_size, Hp, Vp),
    }


def rnn_forward(pparams, x, hidden):
    """Mirrors RNN.forward(x, hidden) for rnn_type='RNN', num_layers=1.

    x      : (1, seq) int32 token ids   (batch=1, as the module assumes)
    hidden : (1, 1, hidden) float32
    returns (log_probs (seq, vocab), hidden (1, 1, hidden))
    """
    V, E, H, Hp, Vp = pparams["dims"]
    seq = x.shape[1]
    s_pad = _round_up(seq, SUBLANE)

    tokens = x[0].astype(jnp.int32)                            # (S,)
    h0 = jnp.pad(hidden.reshape(1, H), ((0, 0), (0, Hp - H)))  # (1, Hp)

    flops = 2 * seq * (Hp * Hp + Hp * Vp)
    transcendentals = seq * (Hp + Vp + 1)                      # tanh + exp + log
    bytes_accessed = 4 * (pparams["xtab"].shape[0] * Hp + Hp * Hp
                          + (Hp + SUBLANE) * Vp + Hp
                          + seq * Vp + Hp) + 4 * seq

    probs_p, hout_p = pl.pallas_call(
        rnn_forward_kernel,
        out_shape=(
            jax.ShapeDtypeStruct((seq, Vp), jnp.float32),
            jax.ShapeDtypeStruct((1, Hp), jnp.float32),
        ),
        in_specs=[pl.BlockSpec(memory_space=pltpu.MemorySpace.SMEM)]
                 + [pl.BlockSpec(memory_space=pltpu.MemorySpace.VMEM)] * 4,
        out_specs=(
            pl.BlockSpec(memory_space=pltpu.MemorySpace.VMEM),
            pl.BlockSpec(memory_space=pltpu.MemorySpace.VMEM),
        ),
        scratch_shapes=[pltpu.VMEM((s_pad, Hp), jnp.float32)],
        cost_estimate=pl.CostEstimate(
            flops=flops,
            transcendentals=transcendentals,
            bytes_accessed=bytes_accessed),
    )(tokens, pparams["xtab"], pparams["w_hh"], pparams["woutb"], h0)

    probs = probs_p[:, :V]
    h_final = hout_p[:, :H].reshape(1, 1, H)
    return probs, h_final


def rnn_forward_ref(params, x, hidden):
    """Pure-JAX reference (same math, unpadded) for correctness checking."""
    x_e = params["emb"][x[0]]
    h = hidden.reshape(1, -1)

    def step(h, x_t):
        h_new = jnp.tanh(x_t[None, :] @ params["w_ih"] + h @ params["w_hh"]
                         + params["b_h"])
        return h_new, h_new[0]

    h_final, hs = lax.scan(step, h, x_e)
    logits = hs @ params["w_out"] + params["b_out"]
    probs = jax.nn.log_softmax(logits, axis=-1)
    return probs, h_final.reshape(1, 1, -1)


def init_params(key, vocab_size, embedding_dim, hidden_size):
    ks = jax.random.split(key, 6)
    # nn.Embedding: N(0, 1)
    emb = jax.random.normal(ks[0], (vocab_size, embedding_dim), jnp.float32)
    # nn.RNN default init: U(-1/sqrt(H), 1/sqrt(H)); stored transposed (in, out).
    s = 1.0 / jnp.sqrt(jnp.float32(hidden_size))
    w_ih = jax.random.uniform(ks[1], (embedding_dim, hidden_size), jnp.float32, -s, s)
    w_hh = jax.random.uniform(ks[2], (hidden_size, hidden_size), jnp.float32, -s, s)
    b_ih = jax.random.uniform(ks[3], (1, hidden_size), jnp.float32, -s, s)
    b_hh = jax.random.uniform(ks[4], (1, hidden_size), jnp.float32, -s, s)
    # Logits: glorot-normal weight, zero bias; stored transposed (H, V).
    g_std = jnp.sqrt(2.0 / jnp.float32(hidden_size + vocab_size))
    w_out = g_std * jax.random.normal(ks[5], (hidden_size, vocab_size), jnp.float32)
    b_out = jnp.zeros((1, vocab_size), jnp.float32)
    return {
        "emb": emb,
        "w_ih": w_ih,
        "w_hh": w_hh,
        "b_h": b_ih + b_hh,   # combined bias, exactly equivalent
        "w_out": w_out,
        "b_out": b_out,
    }


if __name__ == "__main__":
    vocab_size = 32      # input_size (vocab)
    embedding_dim = 64
    hidden_size = 32
    seq_len = 8
    num_layers, batch_size = 1, 1

    key = jax.random.PRNGKey(0)
    kp, kx = jax.random.split(key)
    params = init_params(kp, vocab_size, embedding_dim, hidden_size)
    pparams = prepare_params(params, vocab_size, embedding_dim, hidden_size)

    # x: (batch=1, seq) token ids; hidden: init_hidden() -> zeros(1, 1, H)
    x = jax.random.randint(kx, (batch_size, seq_len), 0, vocab_size, dtype=jnp.int32)
    hidden = jnp.zeros((num_layers, batch_size, hidden_size), jnp.float32)

    probs, h = rnn_forward(pparams, x, hidden)
    jax.block_until_ready((probs, h))

    probs_ref, h_ref = rnn_forward_ref(params, x, hidden)
    assert probs.shape == (seq_len, vocab_size)
    assert h.shape == (num_layers, batch_size, hidden_size)
    assert jnp.allclose(probs, probs_ref, atol=1e-4, rtol=1e-4)
    assert jnp.allclose(h, h_ref, atol=1e-4, rtol=1e-4)

    print("KERNEL_OK")
</pallas_src>

<mosaic_0001>
module attributes {stable_mosaic.version = 11 : i64} {
  func.func @rnn_forward_kernel(%arg0: memref<8xi32, #tpu.memory_space<smem>>, %arg1: memref<32x128xf32, #tpu.memory_space<vmem>>, %arg2: memref<128x128xf32, #tpu.memory_space<vmem>>, %arg3: memref<136x128xf32, #tpu.memory_space<vmem>>, %arg4: memref<1x128xf32, #tpu.memory_space<vmem>>, %arg5: memref<8x128xf32, #tpu.memory_space<vmem>>, %arg6: memref<1x128xf32, #tpu.memory_space<vmem>>, %arg7: memref<8x128xf32, #tpu.memory_space<vmem>>) attributes {dimension_semantics = [], scalar_prefetch = 0 : i64, scratch_operands = 1 : i64, tpu.core_type = #tpu.core_type<tc>} {
    %c0 = arith.constant 0 : index
    %c0_0 = arith.constant 0 : index
    %0 = vector.load %arg2[%c0, %c0_0] : memref<128x128xf32, #tpu.memory_space<vmem>>, vector<128x128xf32>
    %c0_1 = arith.constant 0 : index
    %c0_2 = arith.constant 0 : index
    %1 = vector.load %arg4[%c0_1, %c0_2] : memref<1x128xf32, #tpu.memory_space<vmem>>, vector<1x128xf32>
    %c0_3 = arith.constant 0 : index
    %2 = memref.load %arg0[%c0_3] : memref<8xi32, #tpu.memory_space<smem>>
    %3 = arith.index_cast %2 : i32 to index
    %c0_4 = arith.constant 0 : index
    %4 = vector.load %arg1[%3, %c0_4] : memref<32x128xf32, #tpu.memory_space<vmem>>, vector<1x128xf32>
    %cst = arith.constant dense<0.000000e+00> : vector<1x128xf32>
    %5 = tpu.matmul %1, %0, %cst {dimension_numbers = #tpu.dot_dimension_numbers<[1], [0], [0], [1], [0, 0, 1, 1], [], []>} : vector<1x128xf32>, vector<128x128xf32>, vector<1x128xf32> -> vector<1x128xf32>
    %6 = arith.addf %4, %5 : vector<1x128xf32>
    %7 = math.tanh %6 : vector<1x128xf32>
    %c0_5 = arith.constant 0 : index
    %c0_6 = arith.constant 0 : index
    %8 = vector.load %arg7[%c0_5, %c0_6] : memref<8x128xf32, #tpu.memory_space<vmem>>, vector<1x128xf32>
    tpu.vector_store %arg7[%c0_5, %c0_6], %7 {strides = array<i32>} : memref<8x128xf32, #tpu.memory_space<vmem>>, vector<1x128xf32>,
    %c1 = arith.constant 1 : index
    %9 = memref.load %arg0[%c1] : memref<8xi32, #tpu.memory_space<smem>>
    %10 = arith.index_cast %9 : i32 to index
    %c0_7 = arith.constant 0 : index
    %11 = vector.load %arg1[%10, %c0_7] : memref<32x128xf32, #tpu.memory_space<vmem>>, vector<1x128xf32>
    %cst_8 = arith.constant dense<0.000000e+00> : vector<1x128xf32>
    %12 = tpu.matmul %7, %0, %cst_8 {dimension_numbers = #tpu.dot_dimension_numbers<[1], [0], [0], [1], [0, 0, 1, 1], [], []>} : vector<1x128xf32>, vector<128x128xf32>, vector<1x128xf32> -> vector<1x128xf32>
    %13 = arith.addf %11, %12 : vector<1x128xf32>
    %14 = math.tanh %13 : vector<1x128xf32>
    %c1_9 = arith.constant 1 : index
    %c0_10 = arith.constant 0 : index
    %15 = vector.load %arg7[%c1_9, %c0_10] : memref<8x128xf32, #tpu.memory_space<vmem>>, vector<1x128xf32>
    tpu.vector_store %arg7[%c1_9, %c0_10], %14 {strides = array<i32>} : memref<8x128xf32, #tpu.memory_space<vmem>>, vector<1x128xf32>,
    %c2 = arith.constant 2 : index
    %16 = memref.load %arg0[%c2] : memref<8xi32, #tpu.memory_space<smem>>
    %17 = arith.index_cast %16 : i32 to index
    %c0_11 = arith.constant 0 : index
    %18 = vector.load %arg1[%17, %c0_11] : memref<32x128xf32, #tpu.memory_space<vmem>>, vector<1x128xf32>
    %cst_12 = arith.constant dense<0.000000e+00> : vector<1x128xf32>
    %19 = tpu.matmul %14, %0, %cst_12 {dimension_numbers = #tpu.dot_dimension_numbers<[1], [0], [0], [1], [0, 0, 1, 1], [], []>} : vector<1x128xf32>, vector<128x128xf32>, vector<1x128xf32> -> vector<1x128xf32>
    %20 = arith.addf %18, %19 : vector<1x128xf32>
    %21 = math.tanh %20 : vector<1x128xf32>
    %c2_13 = arith.constant 2 : index
    %c0_14 = arith.constant 0 : index
    %22 = vector.load %arg7[%c2_13, %c0_14] : memref<8x128xf32, #tpu.memory_space<vmem>>, vector<1x128xf32>
    tpu.vector_store %arg7[%c2_13, %c0_14], %21 {strides = array<i32>} : memref<8x128xf32, #tpu.memory_space<vmem>>, vector<1x128xf32>,
    %c3 = arith.constant 3 : index
    %23 = memref.load %arg0[%c3] : memref<8xi32, #tpu.memory_space<smem>>
    %24 = arith.index_cast %23 : i32 to index
    %c0_15 = arith.constant 0 : index
    %25 = vector.load %arg1[%24, %c0_15] : memref<32x128xf32, #tpu.memory_space<vmem>>, vector<1x128xf32>
    %cst_16 = arith.constant dense<0.000000e+00> : vector<1x128xf32>
    %26 = tpu.matmul %21, %0, %cst_16 {dimension_numbers = #tpu.dot_dimension_numbers<[1], [0], [0], [1], [0, 0, 1, 1], [], []>} : vector<1x128xf32>, vector<128x128xf32>, vector<1x128xf32> -> vector<1x128xf32>
    %27 = arith.addf %25, %26 : vector<1x128xf32>
    %28 = math.tanh %27 : vector<1x128xf32>
    %c3_17 = arith.constant 3 : index
    %c0_18 = arith.constant 0 : index
    %29 = vector.load %arg7[%c3_17, %c0_18] : memref<8x128xf32, #tpu.memory_space<vmem>>, vector<1x128xf32>
    tpu.vector_store %arg7[%c3_17, %c0_18], %28 {strides = array<i32>} : memref<8x128xf32, #tpu.memory_space<vmem>>, vector<1x128xf32>,
    %c4 = arith.constant 4 : index
    %30 = memref.load %arg0[%c4] : memref<8xi32, #tpu.memory_space<smem>>
    %31 = arith.index_cast %30 : i32 to index
    %c0_19 = arith.constant 0 : index
    %32 = vector.load %arg1[%31, %c0_19] : memref<32x128xf32, #tpu.memory_space<vmem>>, vector<1x128xf32>
    %cst_20 = arith.constant dense<0.000000e+00> : vector<1x128xf32>
    %33 = tpu.matmul %28, %0, %cst_20 {dimension_numbers = #tpu.dot_dimension_numbers<[1], [0], [0], [1], [0, 0, 1, 1], [], []>} : vector<1x128xf32>, vector<128x128xf32>, vector<1x128xf32> -> vector<1x128xf32>
    %34 = arith.addf %32, %33 : vector<1x128xf32>
    %35 = math.tanh %34 : vector<1x128xf32>
    %c4_21 = arith.constant 4 : index
    %c0_22 = arith.constant 0 : index
    %36 = vector.load %arg7[%c4_21, %c0_22] : memref<8x128xf32, #tpu.memory_space<vmem>>, vector<1x128xf32>
    tpu.vector_store %arg7[%c4_21, %c0_22], %35 {strides = array<i32>} : memref<8x128xf32, #tpu.memory_space<vmem>>, vector<1x128xf32>,
    %c5 = arith.constant 5 : index
    %37 = memref.load %arg0[%c5] : memref<8xi32, #tpu.memory_space<smem>>
    %38 = arith.index_cast %37 : i32 to index
    %c0_23 = arith.constant 0 : index
    %39 = vector.load %arg1[%38, %c0_23] : memref<32x128xf32, #tpu.memory_space<vmem>>, vector<1x128xf32>
    %cst_24 = arith.constant dense<0.000000e+00> : vector<1x128xf32>
    %40 = tpu.matmul %35, %0, %cst_24 {dimension_numbers = #tpu.dot_dimension_numbers<[1], [0], [0], [1], [0, 0, 1, 1], [], []>} : vector<1x128xf32>, vector<128x128xf32>, vector<1x128xf32> -> vector<1x128xf32>
    %41 = arith.addf %39, %40 : vector<1x128xf32>
    %42 = math.tanh %41 : vector<1x128xf32>
    %c5_25 = arith.constant 5 : index
    %c0_26 = arith.constant 0 : index
    %43 = vector.load %arg7[%c5_25, %c0_26] : memref<8x128xf32, #tpu.memory_space<vmem>>, vector<1x128xf32>
    tpu.vector_store %arg7[%c5_25, %c0_26], %42 {strides = array<i32>} : memref<8x128xf32, #tpu.memory_space<vmem>>, vector<1x128xf32>,
    %c6 = arith.constant 6 : index
    %44 = memref.load %arg0[%c6] : memref<8xi32, #tpu.memory_space<smem>>
    %45 = arith.index_cast %44 : i32 to index
    %c0_27 = arith.constant 0 : index
    %46 = vector.load %arg1[%45, %c0_27] : memref<32x128xf32, #tpu.memory_space<vmem>>, vector<1x128xf32>
    %cst_28 = arith.constant dense<0.000000e+00> : vector<1x128xf32>
    %47 = tpu.matmul %42, %0, %cst_28 {dimension_numbers = #tpu.dot_dimension_numbers<[1], [0], [0], [1], [0, 0, 1, 1], [], []>} : vector<1x128xf32>, vector<128x128xf32>, vector<1x128xf32> -> vector<1x128xf32>
    %48 = arith.addf %46, %47 : vector<1x128xf32>
    %49 = math.tanh %48 : vector<1x128xf32>
    %c6_29 = arith.constant 6 : index
    %c0_30 = arith.constant 0 : index
    %50 = vector.load %arg7[%c6_29, %c0_30] : memref<8x128xf32, #tpu.memory_space<vmem>>, vector<1x128xf32>
    tpu.vector_store %arg7[%c6_29, %c0_30], %49 {strides = array<i32>} : memref<8x128xf32, #tpu.memory_space<vmem>>, vector<1x128xf32>,
    %c7 = arith.constant 7 : index
    %51 = memref.load %arg0[%c7] : memref<8xi32, #tpu.memory_space<smem>>
    %52 = arith.index_cast %51 : i32 to index
    %c0_31 = arith.constant 0 : index
    %53 = vector.load %arg1[%52, %c0_31] : memref<32x128xf32, #tpu.memory_space<vmem>>, vector<1x128xf32>
    %cst_32 = arith.constant dense<0.000000e+00> : vector<1x128xf32>
    %54 = tpu.matmul %49, %0, %cst_32 {dimension_numbers = #tpu.dot_dimension_numbers<[1], [0], [0], [1], [0, 0, 1, 1], [], []>} : vector<1x128xf32>, vector<128x128xf32>, vector<1x128xf32> -> vector<1x128xf32>
    %55 = arith.addf %53, %54 : vector<1x128xf32>
    %56 = math.tanh %55 : vector<1x128xf32>
    %c7_33 = arith.constant 7 : index
    %c0_34 = arith.constant 0 : index
    %57 = vector.load %arg7[%c7_33, %c0_34] : memref<8x128xf32, #tpu.memory_space<vmem>>, vector<1x128xf32>
    tpu.vector_store %arg7[%c7_33, %c0_34], %56 {strides = array<i32>} : memref<8x128xf32, #tpu.memory_space<vmem>>, vector<1x128xf32>,
    %c0_35 = arith.constant 0 : index
    %c0_36 = arith.constant 0 : index
    %58 = vector.load %arg6[%c0_35, %c0_36] : memref<1x128xf32, #tpu.memory_space<vmem>>, vector<1x128xf32>
    tpu.vector_store %arg6[%c0_35, %c0_36], %56 {strides = array<i32>} : memref<1x128xf32, #tpu.memory_space<vmem>>, vector<1x128xf32>,
    %c0_37 = arith.constant 0 : index
    %c0_38 = arith.constant 0 : index
    %59 = vector.load %arg7[%c0_37, %c0_38] : memref<8x128xf32, #tpu.memory_space<vmem>>, vector<8x128xf32>
    %c0_39 = arith.constant 0 : index
    %c0_40 = arith.constant 0 : index
    %60 = vector.load %arg3[%c0_39, %c0_40] : memref<136x128xf32, #tpu.memory_space<vmem>>, vector<128x128xf32>
    %c128 = arith.constant 128 : index
    %c0_41 = arith.constant 0 : index
    %61 = vector.load %arg3[%c128, %c0_41] : memref<136x128xf32, #tpu.memory_space<vmem>>, vector<1x128xf32>
    %cst_42 = arith.constant dense<0.000000e+00> : vector<8x128xf32>
    %62 = tpu.matmul %59, %60, %cst_42 {dimension_numbers = #tpu.dot_dimension_numbers<[1], [0], [0], [1], [0, 0, 1, 1], [], []>} : vector<8x128xf32>, vector<128x128xf32>, vector<8x128xf32> -> vector<8x128xf32>
    %63 = vector.broadcast %61 : vector<1x128xf32> to vector<8x128xf32>
    %64 = arith.addf %62, %63 : vector<8x128xf32>
    %cst_43 = arith.constant dense<0xFF800000> : vector<8xf32>
    %65 = vector.multi_reduction <maximumf>, %64, %cst_43 [1] : vector<8x128xf32> to vector<8xf32>
    %66 = vector.shape_cast %65 : vector<8xf32> to vector<8x1xf32>
    %67 = vector.broadcast %66 : vector<8x1xf32> to vector<8x128xf32>
    %68 = arith.subf %64, %67 : vector<8x128xf32>
    %69 = math.exp %68 : vector<8x128xf32>
    %cst_44 = arith.constant dense<0.000000e+00> : vector<8xf32>
    %70 = vector.multi_reduction <add>, %69, %cst_44 [1] : vector<8x128xf32> to vector<8xf32>
    %71 = vector.shape_cast %70 : vector<8xf32> to vector<8x1xf32>
    %72 = math.log %71 : vector<8x1xf32>
    %73 = vector.broadcast %72 : vector<8x1xf32> to vector<8x128xf32>
    %74 = arith.subf %68, %73 : vector<8x128xf32>
    %c0_45 = arith.constant 0 : index
    %c0_46 = arith.constant 0 : index
    %75 = vector.load %arg5[%c0_45, %c0_46] : memref<8x128xf32, #tpu.memory_space<vmem>>, vector<8x128xf32>
    tpu.vector_store %arg5[%c0_45, %c0_46], %74 {strides = array<i32>} : memref<8x128xf32, #tpu.memory_space<vmem>>, vector<8x128xf32>,
    return
  }
}

</mosaic_0001>

<bundles_post_ra>
// kernel: tpu_custom_call.1
= control target key start
LH: loop header
LB: loop body
LE: loop exit
PB: predicated region body
PF: predicated region fallthrough
CT: control target
= control target key end

     0   :  { %12 = vsyncpa [#allocation6], 0  ;;  %s1997_s0 = inlined_call_operand.hbm [shape: s32[8], index: 0, kind: input, shape index: {}]   ;;  %s1998_s1 = inlined_call_operand.hbm [shape: f32[32,128], index: 1, kind: input, shape index: {}]   ;;  %s1999_s2 = inlined_call_operand.hbm [shape: f32[128,128], index: 2, kind: input, shape index: {}]   ;;  %s2000_s3 = inlined_call_operand.hbm [shape: f32[136,128], index: 3, kind: input, shape index: {}]   ;;  %s2001_s4 = inlined_call_operand.vmem [shape: f32[1,128], index: 4, kind: input, shape index: {}]   ;;  %s2002_s5 = inlined_call_operand.hbm [shape: f32[8,128], index: 5, kind: output, shape index: {0}]   ;;  %s2003_s6 = inlined_call_operand.hbm [shape: f32[1,128], index: 6, kind: output, shape index: {1}]  }
   0x1   :  { %13 = vsyncpa [#allocation4], 0 }
   0x2   :  { %14 = vsyncpa [#allocation9], 0 }
   0x3   :  { %15 = vsyncpa [#allocation5], 0 }
   0x4   :  { %16 = vsyncpa [#allocation13], 0  ;;  %s1697_s21 = smov [#allocation8]   ;;  %s1698_s23 = smov [#allocation7]  }
   0x5   :  { %s42_s22 = sshll.u32 %s1697_s21, 4  ;;  %s30_s24 = sshll.u32 %s1698_s23, 4  ;;  %s43_s22 = int_to_ptr.vmem [resolvable:$true] %s42_s22  ;;  %s31_s24 = int_to_ptr.vmem [resolvable:$true] %s30_s24 }
   0x6   :  { %s1567_s27 = scalar_lea.hbm %s1999_s2, 2048 }
   0x7   :  { %p1568_p0 = scmp.ne.s32.totalorder %s1999_s2, %s1567_s27  ;;  %p1571_p1 = scmp.lt.u32.totalorder %s1567_s27, %s1999_s2 }
   0x9   :  { %p1573_p2 = pnand %p1571_p1, %p1568_p0 }
   0xb   :  { %1576 = shalt.err (!%p1573_p2)
}
   0xc   :  { %s1577_s8 = scalar_lea.vmem %s43_s22, 2048  ;;  %p1582_p4 = scmp.lt.s32.totalorder %s43_s22, %s43_s22 }
   0xd   :  { %p1578_p3 = scmp.ne.s32.totalorder %s43_s22, %s1577_s8  ;;  %p1583_p5 = scmp.lt.s32.totalorder %s1577_s8, %s1577_s8 }
   0xf   :  { %p1584_p6 = por %p1583_p5, %p1582_p4 }
  0x11   :  { %p1585_p7 = pnand %p1584_p6, %p1578_p3 }
  0x13   :  { %1588 = shalt.err (!%p1585_p7)
}
  0x14   :  { %s1699_s9 = smov 128   ;;  %s1700_s10 = smov 8  }
  0x15   :  { %48 = dma.hbm_to_vmem [thread:$0]  %s1999_s2, 2048, %s43_s22, [#allocation9], %s1699_s9, %s1699_s9, %s1700_s10  }
  0x16   :  { %s1589_s15 = scalar_lea.hbm %s1997_s0, 16 }
  0x17   :  { %p1590_p8 = scmp.ne.s32.totalorder %s1997_s0, %s1589_s15  ;;  %p1593_p9 = scmp.lt.u32.totalorder %s1589_s15, %s1997_s0 }
  0x19   :  { %p1595_p10 = pnand %p1593_p9, %p1590_p8 }
  0x1b   :  { %1598 = shalt.err (!%p1595_p10)
}
  0x1c   :  { %s1701_s20 = smov [#allocation3]   ;;  %s1599_s25 = scalar_lea.hbm %s1998_s1, 512 }
  0x1d   :  { %24 = dma.hbm_to_smem %s1997_s0, 16, %s1701_s20, [#allocation6]  }
  0x1e   :  { %p1600_p11 = scmp.ne.s32.totalorder %s1998_s1, %s1599_s25  ;;  %p1603_p12 = scmp.lt.u32.totalorder %s1599_s25, %s1998_s1 }
  0x20   :  { %p1605_p13 = pnand %p1603_p12, %p1600_p11 }
  0x22   :  { %1608 = shalt.err (!%p1605_p13)
}
  0x23   :  { %s1609_s30 = scalar_lea.vmem %s31_s24, 512  ;;  %p1614_p1 = scmp.lt.s32.totalorder %s31_s24, %s31_s24 }
  0x24   :  { %p1610_p0 = scmp.ne.s32.totalorder %s31_s24, %s1609_s30  ;;  %p1615_p2 = scmp.lt.s32.totalorder %s1609_s30, %s1609_s30 }
  0x26   :  { %p1616_p3 = por %p1615_p2, %p1614_p1 }
  0x28   :  { %p1617_p4 = pnand %p1616_p3, %p1610_p0 }
  0x2a   :  { %1620 = shalt.err (!%p1617_p4)
}
  0x2b   :  { %36 = dma.hbm_to_vmem [thread:$0]  %s1998_s1, 512, %s31_s24, [#allocation4], %s1699_s9, %s1699_s9, %s1700_s10  }
  0x2c   :  { %s1702_s8 = smov [#allocation10]   ;;  %s1621_s14 = scalar_lea.hbm %s2000_s3, 2176 }
  0x2d   :  { %s54_s11 = sshll.u32 %s1702_s8, 4  ;;  %p1622_p5 = scmp.ne.s32.totalorder %s2000_s3, %s1621_s14  ;;  %s55_s11 = int_to_ptr.vmem [resolvable:$true] %s54_s11 }
  0x2e   :  { %p1625_p6 = scmp.lt.u32.totalorder %s1621_s14, %s2000_s3 }
  0x30   :  { %p1627_p7 = pnand %p1625_p6, %p1622_p5 }
  0x32   :  { %1630 = shalt.err (!%p1627_p7)
}
  0x33   :  { %s1631_s19 = scalar_lea.vmem %s55_s11, 2176  ;;  %p1636_p9 = scmp.lt.s32.totalorder %s55_s11, %s55_s11 }
  0x34   :  { %p1632_p8 = scmp.ne.s32.totalorder %s55_s11, %s1631_s19  ;;  %p1637_p10 = scmp.lt.s32.totalorder %s1631_s19, %s1631_s19 }
  0x36   :  { %p1638_p11 = por %p1637_p10, %p1636_p9 }
  0x38   :  { %p1639_p12 = pnand %p1638_p11, %p1632_p8 }
  0x3a   :  { %1642 = shalt.err (!%p1639_p12)
}
  0x3b   :  { %60 = dma.hbm_to_vmem [thread:$0]  %s2000_s3, 2176, %s55_s11, [#allocation9], %s1699_s9, %s1699_s9, %s1700_s10  }
  0x3c   :  { %1687 = dma.done.wait [#allocation6], 16  }
  0x3d   :  { %1688 = vsyncadd [#allocation6], 4294967280 }
  0x3e   :  { %1689 = dma.done.wait [#allocation4], 512  }
  0x3f   :  { %1690 = vsyncadd [#allocation4], 4294966784 }
  0x40   :  { %1691 = dma.done.wait [#allocation9], 4224  }
  0x41   :  { %1692 = vsyncadd [#allocation9], 4294963072 }
  0x42   :  { %75 = sfence }
  0x43   :  { %v76_v0 = vld [vmem:[#allocation8] sm:$0xff]  ;;  %v77_v1 = vld [vmem:[#allocation8 + $0x8] sm:$0xff]  ;;  %v78_v2 = vld [vmem:[#allocation8 + $0x10] sm:$0xff]  ;;  %v1703_v3 = vmov 0.0|0.0   ;;  %vm1704_vm0 = vmmov 0   ;;  %v1705_v6 = vmov 0.0  }
  0x44   :  { %1320 = vmatprep.subr.bf16.mxu0 %v1703_v3  ;;  %v1801_v4 = vpack.c.bf16 %v77_v1, %v76_v0  ;;  %v79_v5 = vld [vmem:[#allocation8 + $0x18] sm:$0xff]  ;;  %1037 = vmatprep.mubr.msk.f32.mxu0 %vm1704_vm0, %v1705_v6  ;;  %v80_v8 = vld [vmem:[#allocation8 + $0x20] sm:$0xff]  ;;  %v81_v9 = vld [vmem:[#allocation8 + $0x28] sm:$0xff]  ;;  %s844_s20 = sld [smem:[#allocation3 + $0x1]]  ;;  %s845_s23 = sld [smem:[#allocation3 + $0x2]] }
  0x45   :  { %1344 = vmatprep.subr.bf16.mxu1 %v1703_v3  ;;  %1072 = vmatprep.mubr.msk.f32.mxu1 %vm1704_vm0, %v1705_v6  ;;  %v1809_v7 = vpack.c.bf16 %v79_v5, %v78_v2  ;;  %v1815_v10 = vpack.c.bf16 %v81_v9, %v80_v8  ;;  %v82_v11 = vld [vmem:[#allocation8 + $0x30] sm:$0xff]  ;;  %v83_v12 = vld [vmem:[#allocation8 + $0x38] sm:$0xff]  ;;  %v84_v14 = vld [vmem:[#allocation8 + $0x40] sm:$0xff]  ;;  %s846_s22 = sld [smem:[#allocation3 + $0x3]]  ;;  %s847_s26 = sld [smem:[#allocation3 + $0x4]] }
  0x46   :  { %1322 = vmatpush3.bf16.msra.mxu0 %v1801_v4  ;;  %1346 = vmatpush3.bf16.msra.mxu1 %v1801_v4  ;;  %v1821_v13 = vpack.c.bf16 %v83_v12, %v82_v11  ;;  %v85_v15 = vld [vmem:[#allocation8 + $0x48] sm:$0xff]  ;;  %v86_v17 = vld [vmem:[#allocation8 + $0x50] sm:$0xff]  ;;  %v87_v18 = vld [vmem:[#allocation8 + $0x58] sm:$0xff]  ;;  %s848_s28 = sld [smem:[#allocation3 + $0x5]]  ;;  %s849_s30 = sld [smem:[#allocation3 + $0x6]] }
  0x47   :  { %1323 = vmatprep.subr.bf16.mxu0 %v1703_v3  ;;  %1347 = vmatprep.subr.bf16.mxu1 %v1703_v3  ;;  %v1827_v16 = vpack.c.bf16 %v85_v15, %v84_v14  ;;  %v1833_v19 = vpack.c.bf16 %v87_v18, %v86_v17  ;;  %v88_v20 = vld [vmem:[#allocation8 + $0x60] sm:$0xff]  ;;  %v89_v21 = vld [vmem:[#allocation8 + $0x68] sm:$0xff]  ;;  %v90_v23 = vld [vmem:[#allocation8 + $0x70] sm:$0xff]  ;;  %s850_s7 = sld [smem:[#allocation3 + $0x7]]  ;;  %s1706_s11 = smov [#allocation12]  }
  0x48   :  { %v1839_v22 = vpack.c.bf16 %v89_v21, %v88_v20  ;;  %v91_v24 = vld [vmem:[#allocation8 + $0x78] sm:$0xff]  ;;  %v703_v57 = vld [vmem:[#allocation10] sm:$0xff]  ;;  %v704_v58 = vld [vmem:[#allocation10 + $0x8] sm:$0xff]  ;;  %s821_s12 = sshll.u32 %s1706_s11, 4  ;;  %s822_s12 = int_to_ptr.vmem [resolvable:$true] %s821_s12 }
  0x49   :  { %v1845_v25 = vpack.c.bf16 %v91_v24, %v90_v23  ;;  %v92_v26 = vld [vmem:[%s2001_s4] sm:$0x1]  ;;  %s93_s4 = sld [smem:[#allocation3]]  ;;  %v705_v59 = vld [vmem:[#allocation10 + $0x10] sm:$0xff]  ;;  %v1513_v60 = vpack.c.bf16 %v704_v58, %v703_v57  ;;  %v707_v63 = vld [vmem:[#allocation10 + $0x20] sm:$0xff]  ;;  %s1643_s13 = scalar_lea.vmem %s822_s12, 16 }
  0x4a   :  { %1325 = vmatpush3.bf16.msra.mxu0 %v1809_v7  ;;  %1349 = vmatpush3.bf16.msra.mxu1 %v1809_v7  ;;  %s170_s21 = scalar_lea.vmem [#allocation7], %s844_s20  ;;  %s246_s2 = scalar_lea.vmem [#allocation7], %s845_s23  ;;  %v706_v61 = vld [vmem:[#allocation10 + $0x18] sm:$0xff]  ;;  %v708_v0 = vld [vmem:[#allocation10 + $0x28] sm:$0xff]  ;;  %v709_v8 = vld [vmem:[#allocation10 + $0x30] sm:$0xff] }
  0x4b   :  { %1326 = vmatprep.subr.bf16.mxu0 %v1703_v3  ;;  %1350 = vmatprep.subr.bf16.mxu1 %v1703_v3  ;;  %v171_v32 = vld [vmem:[%s170_s21] sm:$0x1]  ;;  %s322_s25 = scalar_lea.vmem [#allocation7], %s846_s22  ;;  %s398_s27 = scalar_lea.vmem [#allocation7], %s847_s26  ;;  %v1516_v62 = vpack.c.bf16 %v706_v61, %v705_v59  ;;  %v1519_v1 = vpack.c.bf16 %v708_v0, %v707_v63  ;;  %v711_v11 = vld [vmem:[#allocation10 + $0x40] sm:$0xff]  ;;  %v712_v12 = vld [vmem:[#allocation10 + $0x48] sm:$0xff] }
  0x4c   :  { %v247_v37 = vld [vmem:[%s246_s2] sm:$0x1]  ;;  %s474_s29 = scalar_lea.vmem [#allocation7], %s848_s28  ;;  %s550_s0 = scalar_lea.vmem [#allocation7], %s849_s30  ;;  %v713_v14 = vld [vmem:[#allocation10 + $0x50] sm:$0xff]  ;;  %v715_v17 = vld [vmem:[#allocation10 + $0x60] sm:$0xff] }
  0x4d   :  { %v323_v42 = vld [vmem:[%s322_s25] sm:$0x1]  ;;  %v716_v18 = vld [vmem:[#allocation10 + $0x68] sm:$0xff]  ;;  %v717_v20 = vld [vmem:[#allocation10 + $0x70] sm:$0xff]  ;;  %s626_s8 = scalar_lea.vmem [#allocation7], %s850_s7  ;;  %p1644_p13 = scmp.ne.s32.totalorder %s822_s12, %s1643_s13 }
  0x4e   :  { %1328 = vmatpush3.bf16.msra.mxu0 %v1815_v10  ;;  %1352 = vmatpush3.bf16.msra.mxu1 %v1815_v10  ;;  %v399_v47 = vld [vmem:[%s398_s27] sm:$0x1]  ;;  %s1647_s14 = scalar_lea.vmem %s822_s12, 32  ;;  %p1648_p0 = scmp.lt.s32.totalorder %s822_s12, %s822_s12 }
  0x4f   :  { %1329 = vmatprep.subr.bf16.mxu0 %v1703_v3  ;;  %1353 = vmatprep.subr.bf16.mxu1 %v1703_v3  ;;  %s94_s10 = scalar_lea.vmem [#allocation7], %s93_s4  ;;  %v475_v52 = vld [vmem:[%s474_s29] sm:$0x1]  ;;  %p1649_p1 = scmp.lt.s32.totalorder %s1647_s14, %s1643_s13 }
  0x50   :  { %v95_v27 = vld [vmem:[%s94_s10] sm:$0x1] }
  0x51   :  { %v551_v2 = vld [vmem:[%s550_s0] sm:$0x1]  ;;  %p1650_p2 = por %p1649_p1, %p1648_p0 }
  0x52   :  { %1331 = vmatpush3.bf16.msra.mxu0 %v1821_v13  ;;  %1355 = vmatpush3.bf16.msra.mxu1 %v1821_v13  ;;  %v710_v9 = vld [vmem:[#allocation10 + $0x38] sm:$0xff] }
  0x53   :  { %1332 = vmatprep.subr.bf16.mxu0 %v1703_v3  ;;  %1356 = vmatprep.subr.bf16.mxu1 %v1703_v3  ;;  %v714_v15 = vld [vmem:[#allocation10 + $0x58] sm:$0xff]  ;;  %p1651_p3 = pnand %p1650_p2, %p1644_p13 }
  0x54   :  { %v718_v21 = vld [vmem:[#allocation10 + $0x78] sm:$0xff] }
  0x55   :  { %v627_v23 = vld [vmem:[%s626_s8] sm:$0x1] }
  0x56   :  { %1334 = vmatpush3.bf16.msra.mxu0 %v1827_v16  ;;  %1358 = vmatpush3.bf16.msra.mxu1 %v1827_v16 }
  0x57   :  { %1335 = vmatprep.subr.bf16.mxu0 %v1703_v3  ;;  %1359 = vmatprep.subr.bf16.mxu1 %v1703_v3 }
  0x5a   :  { %1337 = vmatpush3.bf16.msra.mxu0 %v1833_v19  ;;  %1361 = vmatpush3.bf16.msra.mxu1 %v1833_v19 }
  0x5b   :  { %1338 = vmatprep.subr.bf16.mxu0 %v1703_v3  ;;  %1362 = vmatprep.subr.bf16.mxu1 %v1703_v3 }
  0x5e   :  { %1340 = vmatpush3.bf16.msra.mxu0 %v1839_v22  ;;  %1364 = vmatpush3.bf16.msra.mxu1 %v1839_v22 }
  0x5f   :  { %1341 = vmatprep.subr.bf16.mxu0 %v1703_v3  ;;  %1365 = vmatprep.subr.bf16.mxu1 %v1703_v3 }
  0x62   :  { %1343 = vmatpush3.bf16.msra.mxu0 %v1845_v25  ;;  %1367 = vmatpush3.bf16.msra.mxu1 %v1845_v25 }
  0x63   :  { %1368 = vmatprep.subr.bf16.mxu0 %v1703_v3  ;;  %1392 = vmatprep.subr.bf16.mxu1 %v1703_v3 }
  0x65   :  { %1038 = vmatmul.mubr.f32.vlgmr.msra.gmra.mrb[0].mxu0 %v92_v26 }
  0x66   :  { %1370 = vmatpush3.bf16.msra.mxu0 %v1801_v4  ;;  %1107 = vmatprep.mubr.msk.f32.mxu0 %vm1704_vm0, %v1705_v6 }
  0x67   :  { %1371 = vmatprep.subr.bf16.mxu0 %v1703_v3 }
  0x6a   :  { %1373 = vmatpush3.bf16.msra.mxu0 %v1809_v7 }
  0x6b   :  { %1374 = vmatprep.subr.bf16.mxu0 %v1703_v3 }
  0x6e   :  { %1376 = vmatpush3.bf16.msra.mxu0 %v1815_v10 }
  0x6f   :  { %1377 = vmatprep.subr.bf16.mxu0 %v1703_v3 }
  0x72   :  { %1379 = vmatpush3.bf16.msra.mxu0 %v1821_v13 }
  0x73   :  { %1380 = vmatprep.subr.bf16.mxu0 %v1703_v3 }
  0x76   :  { %1382 = vmatpush3.bf16.msra.mxu0 %v1827_v16 }
  0x77   :  { %1383 = vmatprep.subr.bf16.mxu0 %v1703_v3 }
  0x7a   :  { %1385 = vmatpush3.bf16.msra.mxu0 %v1833_v19 }
  0x7b   :  { %1386 = vmatprep.subr.bf16.mxu0 %v1703_v3 }
  0x7e   :  { %1388 = vmatpush3.bf16.msra.mxu0 %v1839_v22 }
  0x7f   :  { %1389 = vmatprep.subr.bf16.mxu0 %v1703_v3 }
  0x82   :  { %1391 = vmatpush3.bf16.msra.mxu0 %v1845_v25 }
  0x83   :  { %1416 = vmatprep.subr.bf16.mxu0 %v1703_v3 }
 0x138   :  { %v162_v28 = vpop.f32.mrb[0].mxu0 }
 0x139   :  { %v166_v29 = vadd.f32 %v162_v28, %v95_v27  ;;  %v1039_v30 = vpop.f32.mrb[1].mxu0 }
 0x13b   :  { %1547 = vtanh.f32 %v166_v29  ;;  %v851_v29 = vld [vmem:[#allocation10 + $0x80] ss:$0 sm:$0xff] }
 0x145   :  { %v1548_v31 = vpop.eup %1547 }
 0x146   :  { %168 = vst [vmem:[#allocation2] sm:$0x1] %v1548_v31  ;;  %1073 = vmatmul.mubr.f32.vlgmr.msra.gmra.mrb[0].mxu1 %v1548_v31 }
 0x147   :  { %1394 = vmatpush3.bf16.msra.mxu1 %v1801_v4  ;;  %1142 = vmatprep.mubr.msk.f32.mxu1 %vm1704_vm0, %v1705_v6 }
 0x148   :  { %1395 = vmatprep.subr.bf16.mxu1 %v1703_v3 }
 0x14b   :  { %1397 = vmatpush3.bf16.msra.mxu1 %v1809_v7 }
 0x14c   :  { %1398 = vmatprep.subr.bf16.mxu1 %v1703_v3 }
 0x14f   :  { %1400 = vmatpush3.bf16.msra.mxu1 %v1815_v10 }
 0x150   :  { %1401 = vmatprep.subr.bf16.mxu1 %v1703_v3 }
 0x153   :  { %1403 = vmatpush3.bf16.msra.mxu1 %v1821_v13 }
 0x154   :  { %1404 = vmatprep.subr.bf16.mxu1 %v1703_v3 }
 0x157   :  { %1406 = vmatpush3.bf16.msra.mxu1 %v1827_v16 }
 0x158   :  { %1407 = vmatprep.subr.bf16.mxu1 %v1703_v3 }
 0x15b   :  { %1409 = vmatpush3.bf16.msra.mxu1 %v1833_v19 }
 0x15c   :  { %1410 = vmatprep.subr.bf16.mxu1 %v1703_v3 }
 0x15f   :  { %1412 = vmatpush3.bf16.msra.mxu1 %v1839_v22 }
 0x160   :  { %1413 = vmatprep.subr.bf16.mxu1 %v1703_v3 }
 0x163   :  { %1415 = vmatpush3.bf16.msra.mxu1 %v1845_v25 }
 0x164   :  { %1440 = vmatprep.subr.bf16.mxu1 %v1703_v3 }
 0x219   :  { %v238_v33 = vpop.f32.mrb[0].mxu1 }
 0x21a   :  { %v242_v34 = vadd.f32 %v238_v33, %v171_v32  ;;  %v1074_v35 = vpop.f32.mrb[1].mxu1 }
 0x21c   :  { %1549 = vtanh.f32 %v242_v34 }
 0x226   :  { %v1550_v36 = vpop.eup %1549 }
 0x227   :  { %244 = vst [vmem:[#allocation2 + $0x1] sm:$0x1] %v1550_v36  ;;  %1108 = vmatmul.mubr.f32.vlgmr.msra.gmra.mrb[2].mxu0 %v1550_v36 }
 0x228   :  { %1418 = vmatpush3.bf16.msra.mxu0 %v1801_v4  ;;  %1177 = vmatprep.mubr.msk.f32.mxu0 %vm1704_vm0, %v1705_v6 }
 0x229   :  { %1419 = vmatprep.subr.bf16.mxu0 %v1703_v3 }
 0x22c   :  { %1421 = vmatpush3.bf16.msra.mxu0 %v1809_v7 }
 0x22d   :  { %1422 = vmatprep.subr.bf16.mxu0 %v1703_v3 }
 0x230   :  { %1424 = vmatpush3.bf16.msra.mxu0 %v1815_v10 }
 0x231   :  { %1425 = vmatprep.subr.bf16.mxu0 %v1703_v3 }
 0x234   :  { %1427 = vmatpush3.bf16.msra.mxu0 %v1821_v13 }
 0x235   :  { %1428 = vmatprep.subr.bf16.mxu0 %v1703_v3 }
 0x238   :  { %1430 = vmatpush3.bf16.msra.mxu0 %v1827_v16 }
 0x239   :  { %1431 = vmatprep.subr.bf16.mxu0 %v1703_v3 }
 0x23c   :  { %1433 = vmatpush3.bf16.msra.mxu0 %v1833_v19 }
 0x23d   :  { %1434 = vmatprep.subr.bf16.mxu0 %v1703_v3 }
 0x240   :  { %1436 = vmatpush3.bf16.msra.mxu0 %v1839_v22 }
 0x241   :  { %1437 = vmatprep.subr.bf16.mxu0 %v1703_v3 }
 0x244   :  { %1439 = vmatpush3.bf16.msra.mxu0 %v1845_v25 }
 0x245   :  { %1464 = vmatprep.subr.bf16.mxu0 %v1703_v3 }
 0x2fa   :  { %v314_v38 = vpop.f32.mrb[2].mxu0 }
 0x2fb   :  { %v318_v39 = vadd.f32 %v314_v38, %v247_v37  ;;  %v1109_v40 = vpop.f32.mrb[3].mxu0 }
 0x2fd   :  { %1551 = vtanh.f32 %v318_v39 }
 0x307   :  { %v1552_v41 = vpop.eup %1551 }
 0x308   :  { %320 = vst [vmem:[#allocation2 + $0x2] sm:$0x1] %v1552_v41  ;;  %1143 = vmatmul.mubr.f32.vlgmr.msra.gmra.mrb[2].mxu1 %v1552_v41 }
 0x309   :  { %1442 = vmatpush3.bf16.msra.mxu1 %v1801_v4  ;;  %1212 = vmatprep.mubr.msk.f32.mxu1 %vm1704_vm0, %v1705_v6 }
 0x30a   :  { %1443 = vmatprep.subr.bf16.mxu1 %v1703_v3 }
 0x30d   :  { %1445 = vmatpush3.bf16.msra.mxu1 %v1809_v7 }
 0x30e   :  { %1446 = vmatprep.subr.bf16.mxu1 %v1703_v3 }
 0x311   :  { %1448 = vmatpush3.bf16.msra.mxu1 %v1815_v10 }
 0x312   :  { %1449 = vmatprep.subr.bf16.mxu1 %v1703_v3 }
 0x315   :  { %1451 = vmatpush3.bf16.msra.mxu1 %v1821_v13 }
 0x316   :  { %1452 = vmatprep.subr.bf16.mxu1 %v1703_v3 }
 0x319   :  { %1454 = vmatpush3.bf16.msra.mxu1 %v1827_v16 }
 0x31a   :  { %1455 = vmatprep.subr.bf16.mxu1 %v1703_v3 }
 0x31d   :  { %1457 = vmatpush3.bf16.msra.mxu1 %v1833_v19 }
 0x31e   :  { %1458 = vmatprep.subr.bf16.mxu1 %v1703_v3 }
 0x321   :  { %1460 = vmatpush3.bf16.msra.mxu1 %v1839_v22 }
 0x322   :  { %1461 = vmatprep.subr.bf16.mxu1 %v1703_v3 }
 0x325   :  { %1463 = vmatpush3.bf16.msra.mxu1 %v1845_v25 }
 0x326   :  { %1488 = vmatprep.subr.bf16.mxu1 %v1703_v3 }
 0x3db   :  { %v390_v43 = vpop.f32.mrb[2].mxu1 }
 0x3dc   :  { %v394_v44 = vadd.f32 %v390_v43, %v323_v42  ;;  %v1144_v45 = vpop.f32.mrb[3].mxu1 }
 0x3de   :  { %1553 = vtanh.f32 %v394_v44 }
 0x3e8   :  { %v1554_v46 = vpop.eup %1553 }
 0x3e9   :  { %396 = vst [vmem:[#allocation2 + $0x3] sm:$0x1] %v1554_v46  ;;  %1178 = vmatmul.mubr.f32.vlgmr.msra.gmra.mrb[4].mxu0 %v1554_v46 }
 0x3ea   :  { %1466 = vmatpush3.bf16.msra.mxu0 %v1801_v4  ;;  %1247 = vmatprep.mubr.msk.f32.mxu0 %vm1704_vm0, %v1705_v6 }
 0x3eb   :  { %1467 = vmatprep.subr.bf16.mxu0 %v1703_v3 }
 0x3ee   :  { %1469 = vmatpush3.bf16.msra.mxu0 %v1809_v7 }
 0x3ef   :  { %1470 = vmatprep.subr.bf16.mxu0 %v1703_v3 }
 0x3f2   :  { %1472 = vmatpush3.bf16.msra.mxu0 %v1815_v10 }
 0x3f3   :  { %1473 = vmatprep.subr.bf16.mxu0 %v1703_v3 }
 0x3f6   :  { %1475 = vmatpush3.bf16.msra.mxu0 %v1821_v13 }
 0x3f7   :  { %1476 = vmatprep.subr.bf16.mxu0 %v1703_v3 }
 0x3fa   :  { %1478 = vmatpush3.bf16.msra.mxu0 %v1827_v16 }
 0x3fb   :  { %1479 = vmatprep.subr.bf16.mxu0 %v1703_v3 }
 0x3fe   :  { %1481 = vmatpush3.bf16.msra.mxu0 %v1833_v19 }
 0x3ff   :  { %1482 = vmatprep.subr.bf16.mxu0 %v1703_v3 }
 0x402   :  { %1484 = vmatpush3.bf16.msra.mxu0 %v1839_v22 }
 0x403   :  { %1485 = vmatprep.subr.bf16.mxu0 %v1703_v3 }
 0x406   :  { %1487 = vmatpush3.bf16.msra.mxu0 %v1845_v25 }
 0x407   :  { %1512 = vmatprep.subr.bf16.mxu0 %v1703_v3 }
 0x4bc   :  { %v466_v48 = vpop.f32.mrb[4].mxu0 }
 0x4bd   :  { %v470_v49 = vadd.f32 %v466_v48, %v399_v47  ;;  %v1179_v50 = vpop.f32.mrb[5].mxu0 }
 0x4bf   :  { %1555 = vtanh.f32 %v470_v49 }
 0x4c9   :  { %v1556_v51 = vpop.eup %1555 }
 0x4ca   :  { %472 = vst [vmem:[#allocation2 + $0x4] sm:$0x1] %v1556_v51  ;;  %1213 = vmatmul.mubr.f32.vlgmr.msra.gmra.mrb[4].mxu1 %v1556_v51 }
 0x4cb   :  { %1490 = vmatpush3.bf16.msra.mxu1 %v1801_v4  ;;  %1282 = vmatprep.mubr.msk.f32.mxu1 %vm1704_vm0, %v1705_v6 }
 0x4cc   :  { %1491 = vmatprep.subr.bf16.mxu1 %v1703_v3 }
 0x4cf   :  { %1493 = vmatpush3.bf16.msra.mxu1 %v1809_v7 }
 0x4d0   :  { %1494 = vmatprep.subr.bf16.mxu1 %v1703_v3 }
 0x4d3   :  { %1496 = vmatpush3.bf16.msra.mxu1 %v1815_v10  ;;  %v1522_v10 = vpack.c.bf16 %v710_v9, %v709_v8 }
 0x4d4   :  { %1497 = vmatprep.subr.bf16.mxu1 %v1703_v3 }
 0x4d7   :  { %1499 = vmatpush3.bf16.msra.mxu1 %v1821_v13  ;;  %v1525_v13 = vpack.c.bf16 %v712_v12, %v711_v11 }
 0x4d8   :  { %1500 = vmatprep.subr.bf16.mxu1 %v1703_v3 }
 0x4db   :  { %1502 = vmatpush3.bf16.msra.mxu1 %v1827_v16  ;;  %v1528_v16 = vpack.c.bf16 %v714_v15, %v713_v14 }
 0x4dc   :  { %1503 = vmatprep.subr.bf16.mxu1 %v1703_v3 }
 0x4df   :  { %1505 = vmatpush3.bf16.msra.mxu1 %v1833_v19  ;;  %v1531_v19 = vpack.c.bf16 %v716_v18, %v715_v17 }
 0x4e0   :  { %1506 = vmatprep.subr.bf16.mxu1 %v1703_v3 }
 0x4e3   :  { %1508 = vmatpush3.bf16.msra.mxu1 %v1839_v22  ;;  %v1534_v22 = vpack.c.bf16 %v718_v21, %v717_v20 }
 0x4e4   :  { %1509 = vmatprep.subr.bf16.mxu1 %v1703_v3 }
 0x4e7   :  { %1511 = vmatpush3.bf16.msra.mxu1 %v1845_v25 }
 0x59d   :  { %v542_v53 = vpop.f32.mrb[4].mxu1 }
 0x59e   :  { %v546_v54 = vadd.f32 %v542_v53, %v475_v52  ;;  %v1214_v55 = vpop.f32.mrb[5].mxu1 }
 0x5a0   :  { %1557 = vtanh.f32 %v546_v54 }
 0x5aa   :  { %v1558_v56 = vpop.eup %1557 }
 0x5ab   :  { %548 = vst [vmem:[#allocation2 + $0x5] sm:$0x1] %v1558_v56  ;;  %1248 = vmatmul.mubr.f32.vlgmr.msra.gmra.mrb[6].mxu0 %v1558_v56 }
 0x5ac   :  { %1317 = vmatprep.mubr.msk.f32.mxu0 %vm1704_vm0, %v1705_v6  ;;  %1514 = vmatpush3.bf16.msra.mxu0 %v1513_v60 }
 0x5ad   :  { %1515 = vmatprep.subr.bf16.mxu0 %v1703_v3 }
 0x5b0   :  { %1517 = vmatpush3.bf16.msra.mxu0 %v1516_v62 }
 0x5b1   :  { %1518 = vmatprep.subr.bf16.mxu0 %v1703_v3 }
 0x5b4   :  { %1520 = vmatpush3.bf16.msra.mxu0 %v1519_v1 }
 0x5b5   :  { %1521 = vmatprep.subr.bf16.mxu0 %v1703_v3 }
 0x5b8   :  { %1523 = vmatpush3.bf16.msra.mxu0 %v1522_v10 }
 0x5b9   :  { %1524 = vmatprep.subr.bf16.mxu0 %v1703_v3 }
 0x5bc   :  { %1526 = vmatpush3.bf16.msra.mxu0 %v1525_v13 }
 0x5bd   :  { %1527 = vmatprep.subr.bf16.mxu0 %v1703_v3 }
 0x5c0   :  { %1529 = vmatpush3.bf16.msra.mxu0 %v1528_v16 }
 0x5c1   :  { %1530 = vmatprep.subr.bf16.mxu0 %v1703_v3 }
 0x5c4   :  { %1532 = vmatpush3.bf16.msra.mxu0 %v1531_v19 }
 0x5c5   :  { %1533 = vmatprep.subr.bf16.mxu0 %v1703_v3 }
 0x5c8   :  { %1535 = vmatpush3.bf16.msra.mxu0 %v1534_v22 }
 0x67e   :  { %v618_v4 = vpop.f32.mrb[6].mxu0 }
 0x67f   :  { %v622_v5 = vadd.f32 %v618_v4, %v551_v2  ;;  %v1249_v6 = vpop.f32.mrb[7].mxu0 }
 0x681   :  { %1559 = vtanh.f32 %v622_v5 }
 0x68b   :  { %v1560_v7 = vpop.eup %1559 }
 0x68c   :  { %624 = vst [vmem:[#allocation2 + $0x6] sm:$0x1] %v1560_v7  ;;  %1283 = vmatmul.mubr.f32.vlgmr.msra.gmra.mrb[6].mxu1 %v1560_v7 }
 0x75f   :  { %v694_v24 = vpop.f32.mrb[6].mxu1 }
 0x760   :  { %v698_v25 = vadd.f32 %v694_v24, %v627_v23  ;;  %v1284_v26 = vpop.f32.mrb[7].mxu1 }
 0x762   :  { %1561 = vtanh.f32 %v698_v25 }
 0x76c   :  { %v1562_v27 = vpop.eup %1561 }
 0x76d   :  { %700 = vst [vmem:[#allocation2 + $0x7] sm:$0x1] %v1562_v27  ;;  %701 = vst [vmem:[#allocation12] sm:$0x1] %v1562_v27 }
 0x774   :  { %v702_v28 = vld [vmem:[#allocation2] sm:$0xff] }
 0x775   :  { %1318 = vmatmul.mubr.f32.vlgmr.msra.gmra.mrb[8].mxu0 %v702_v28 }
 0x848   :  { %v790_v30 = vpop.f32.mrb[8].mxu0 }
 0x849   :  { %v791_v31 = vadd.f32 %v851_v29, %v790_v30  ;;  %v1319_v32 = vpop.f32.mrb[9].mxu0 }
 0x84b   :  { %794 = vmax.xlane.f32.xlu0 %v791_v31 }
 0x8d8   :  { %v795_v33 = vpop.xlane.xlu0 %794 }
 0x8d9   :  { %v796_v3 = vsub.f32 %v791_v31, %v795_v33 }
 0x8db   :  { %v797_v34 = vmul.f32 1.442695, %v796_v3 }
 0x8dd   :  { %1563 = vpow2.f32 %v797_v34 }
 0x8e7   :  { %v1564_v35 = vpop.eup %1563 }
 0x8e8   :  { %799 = vadd.xlane.f32.xlu0 %v1564_v35 }
 0x8e9   :  { %1654 = shalt.err (!%p1651_p3)
}
 0x8ea   :  { %s1655_s17 = scalar_lea.hbm %s2003_s6, 16 }
 0x8eb   :  { %p1656_p4 = scmp.ne.s32.totalorder %s2003_s6, %s1655_s17  ;;  %p1659_p5 = scmp.lt.u32.totalorder %s1655_s17, %s2003_s6 }
 0x8ed   :  { %p1661_p6 = pnand %p1659_p5, %p1656_p4 }
 0x8ef   :  { %1664 = shalt.err (!%p1661_p6)
}
 0x8f0   :  { %824 = dma.vmem_to_hbm [thread:$0]  %s822_s12, 16, %s2003_s6, [#allocation13]  }
 0x8f1   :  { %s1707_s4 = smov [#allocation11]  }
 0x8f2   :  { %s811_s10 = sshll.u32 %s1707_s4, 4  ;;  %s812_s10 = int_to_ptr.vmem [resolvable:$true] %s811_s10 }
 0x8f3   :  { %s1665_s20 = scalar_lea.vmem %s812_s10, 128  ;;  %p1670_p8 = scmp.lt.s32.totalorder %s812_s10, %s812_s10 }
 0x8f4   :  { %p1666_p7 = scmp.ne.s32.totalorder %s812_s10, %s1665_s20  ;;  %p1671_p9 = scmp.lt.s32.totalorder %s1665_s20, %s1665_s20 }
 0x8f6   :  { %p1672_p10 = por %p1671_p9, %p1670_p8 }
 0x8f8   :  { %p1673_p11 = pnand %p1672_p10, %p1666_p7 }
 0x975   :  { %v800_v36 = vpop.xlane.xlu0 %799 }
 0x976   :  { %1565 = vlog2.f32 %v800_v36 }
 0x980   :  { %v1566_v37 = vpop.eup %1565 }
 0x981   :  { %v802_v38 = vmul.f32 0.6931472, %v1566_v37 }
 0x983   :  { %v803_v39 = vsub.f32 %v796_v3, %v802_v38 }
 0x985   :  { %804 = vst [vmem:[#allocation11] sm:$0xff] %v803_v39 }
 0x986   :  { %1676 = shalt.err (!%p1673_p11)
}
 0x987   :  { %s1677_s6 = scalar_lea.hbm %s2002_s5, 128 }
 0x988   :  { %p1678_p12 = scmp.ne.s32.totalorder %s2002_s5, %s1677_s6  ;;  %p1681_p13 = scmp.lt.u32.totalorder %s1677_s6, %s2002_s5 }
 0x98a   :  { %p1683_p0 = pnand %p1681_p13, %p1678_p12 }
 0x98c   :  { %1686 = shalt.err (!%p1683_p0)
}
 0x98d   :  { %814 = dma.vmem_to_hbm [thread:$0]  %s812_s10, 128, %s2002_s5, [#allocation5]  }
 0x98e   :  { %1693 = dma.done.wait [#allocation5], 128  }
 0x98f   :  { %1694 = vsyncadd [#allocation5], 4294967168 }
 0x990   :  { %1695 = dma.done.wait [#allocation13], 16  }
 0x991   :  { %1696 = vsyncadd [#allocation13], 4294967280 }
 0x992   :  { %831 = vsyncpa [#allocation4], 1 }
 0x993   :  { %832 = vsyncpa [#allocation9], 1 }
 0x994   :  { %833 = vsyncpa [#allocation5], 1 }
 0x995   :  { %834 = vsyncpa [#allocation13], 1 }
 0x996   :  { %835 = vsyncpa [#allocation6], 1 }

</bundles_post_ra>
